<compile_context>
chip_gen: v5e
topology: v5e:2x2
jax: 0.10.0
libtpu: 0.0.40
codegen_flags: <defaults>
</compile_context>

<pallas_src>
import functools
import math

import jax
import jax.numpy as jnp
from jax import lax
from jax.experimental import pallas as pl
from jax.experimental.pallas import tpu as pltpu

# Module hyperparameters (match PyTorch __init__ defaults).
EPS = 1e-6
TEMPERATURE = 0.1
TAU_PLUS = 0.1
DEBIASED = True
POS_IN_DENOMINATOR = True

_INV_T = 1.0 / TEMPERATURE
# Contract the last dim of both operands (A @ B.T without materializing B.T).
_DN = (((1,), (1,)), ((), ()))


def _round_up(x, m):
    return ((x + m - 1) // m) * m


def _normalize_kernel(x_ref, o_ref, *, scale):
    """L2-normalize rows and fold in sqrt(1/T) so every later dot product
    already carries the 1/T scale.  rsqrt (EUP) + multiply, no divides."""
    x = x_ref[...].astype(jnp.float32)
    inv = lax.rsqrt(jnp.maximum(jnp.sum(x * x, axis=-1, keepdims=True), 1e-24))
    o_ref[...] = (x * (inv * scale)).astype(o_ref.dtype)


def _ntxent_kernel(n_ref, partial_ref, *, row_tile, b_pad, b_actual):
    i = pl.program_id(0)
    r0 = pl.multiple_of(i * row_tile, row_tile)              # view-1 row offset
    r1 = pl.multiple_of(b_pad + i * row_tile, row_tile)      # view-2 row offset

    n_all = n_ref[...]                                        # [2*Bp, D] (bf16/f32)
    a1 = n_ref[pl.ds(r0, row_tile), :]                        # [TB, D]
    a2 = n_ref[pl.ds(r1, row_tile), :]                        # [TB, D]

    # Two matmuls sharing the same RHS -> MXU weight push amortized; f32 accumulate.
    s1 = lax.dot_general(a1, n_all, _DN, preferred_element_type=jnp.float32)  # [TB, 2Bp]
    s2 = lax.dot_general(a2, n_all, _DN, preferred_element_type=jnp.float32)  # [TB, 2Bp]

    # Negative mask: for pair index g drop columns g (same-view self for a1,
    # positive for a2) and g + b_pad (positive for a1, same-view self for a2).
    # The same mask applies to both blocks.
    two_bp = 2 * b_pad
    pair = lax.broadcasted_iota(jnp.int32, (row_tile, two_bp), 0) + r0
    cols = lax.broadcasted_iota(jnp.int32, (row_tile, two_bp), 1)
    keep = (cols != pair) & (cols != pair + b_pad)
    neg_inf = jnp.float32(-jnp.inf)

    # exp + row-sum fused per block (don't keep both exp blocks live).
    neg1 = jnp.sum(jnp.exp(jnp.where(keep, s1, neg_inf)), axis=-1, keepdims=True)
    neg2 = jnp.sum(jnp.exp(jnp.where(keep, s2, neg_inf)), axis=-1, keepdims=True)

    # Zero-padded rows are exactly zero, so each padded column contributes exactly
    # exp(0) = 1 to every real row; remove them analytically.
    if b_pad != b_actual:
        pad_corr = jnp.float32(2 * (b_pad - b_actual))
        neg1 = neg1 - pad_corr
        neg2 = neg2 - pad_corr

    # Positive pair: logit already carries 1/T (scale folded into normalization).
    pos_logit = jnp.sum(a1.astype(jnp.float32) * a2.astype(jnp.float32),
                        axis=-1, keepdims=True)               # [TB, 1]
    pos = jnp.exp(pos_logit)

    n_neg = 2 * b_actual - 2
    ng_floor = jnp.float32(n_neg * math.exp(-_INV_T))

    def denominator(neg_sum):
        if DEBIASED:
            ng = (pos * (-TAU_PLUS * n_neg) + neg_sum) * (1.0 / (1.0 - TAU_PLUS))
            ng = jnp.maximum(ng, ng_floor)
            return ng + pos
        elif POS_IN_DENOMINATOR:
            return neg_sum + pos
        else:
            return neg_sum

    # -log(pos / (denom + eps)) = log(denom + eps) - pos_logit
    row_losses = (jnp.log(denominator(neg1) + EPS) - pos_logit) + \
                 (jnp.log(denominator(neg2) + EPS) - pos_logit)          # [TB, 1]

    if b_pad != b_actual:   # mask padded rows (static branch)
        valid = (lax.broadcasted_iota(jnp.int32, (row_tile, 1), 0) + r0) < b_actual
        row_losses = jnp.where(valid, row_losses, 0.0)

    # Per-tile partial sum, broadcast to a lane-dense (1, 8, 128) block so the
    # grid axis can be "parallel" (v7x megacore) and stores are unmasked.
    tile_loss = jnp.sum(row_losses, axis=0, keepdims=True)               # (1, 1)
    partial_ref[...] = jnp.broadcast_to(tile_loss.reshape(1, 1, 1), partial_ref.shape)


@functools.partial(jax.jit, static_argnames=("row_tile", "matmul_dtype"))
def ntxent_loss(out_1, out_2, row_tile=256, matmul_dtype=jnp.bfloat16):
    """out_1, out_2: [batch_size, dim] -> scalar loss (float32).

    row_tile: row pairs per grid step (default 256; use 128 on v5e).  Batches that
    are not a multiple of the tile are zero-padded (handled exactly in-kernel).
    matmul_dtype: dtype fed to the MXU (bf16 default; pass jnp.float32 for exact).
    """
    B, D = out_1.shape
    tb = min(row_tile, _round_up(B, 8))
    b_pad = _round_up(B, tb)
    num_tiles = b_pad // tb
    pad = b_pad - B

    x1 = out_1.astype(jnp.float32)
    x2 = out_2.astype(jnp.float32)
    if pad:
        x1 = jnp.pad(x1, ((0, pad), (0, 0)))
        x2 = jnp.pad(x2, ((0, pad), (0, 0)))
    xcat = jnp.concatenate([x1, x2], axis=0)                  # (2*b_pad, D)

    # --- kernel 1: tiled L2 normalization with the 1/T scale folded in ---------
    scale = math.sqrt(1.0 / TEMPERATURE)
    norm = pl.pallas_call(
        functools.partial(_normalize_kernel, scale=scale),
        out_shape=jax.ShapeDtypeStruct((2 * b_pad, D), matmul_dtype),
        grid_spec=pltpu.PrefetchScalarGridSpec(
            num_scalar_prefetch=0,
            grid=(2 * b_pad // tb,),
            in_specs=[pl.BlockSpec((tb, D), lambda i: (i, 0))],
            out_specs=pl.BlockSpec((tb, D), lambda i: (i, 0)),
        ),
        compiler_params=pltpu.CompilerParams(dimension_semantics=("parallel",)),
    )(xcat)

    # --- kernel 2: similarity blocks + debiased NT-Xent per row tile -----------
    itemsize = jnp.dtype(matmul_dtype).itemsize
    norm_bytes = 2 * b_pad * D * itemsize                     # resident stacked buffer
    tile_bytes = tb * (2 * b_pad) * 4                         # one [TB, 2Bp] f32 tile
    vmem_limit = int(min(128 << 20,
                         max(32 << 20, 4 * norm_bytes + 12 * tile_bytes + (1 << 20))))

    partials = pl.pallas_call(
        functools.partial(_ntxent_kernel, row_tile=tb, b_pad=b_pad, b_actual=B),
        out_shape=jax.ShapeDtypeStruct((num_tiles, 8, 128), jnp.float32),
        grid_spec=pltpu.PrefetchScalarGridSpec(
            num_scalar_prefetch=0,
            grid=(num_tiles,),
            # Stacked normalized buffer stays VMEM-resident (constant block index).
            in_specs=[pl.BlockSpec((2 * b_pad, D), lambda i: (0, 0))],
            out_specs=pl.BlockSpec((1, 8, 128), lambda i: (i, 0, 0)),
        ),
        compiler_params=pltpu.CompilerParams(
            dimension_semantics=("parallel",),
            vmem_limit_bytes=vmem_limit,
        ),
    )(norm)

    return jnp.sum(partials[:, 0, 0]) * (1.0 / (2.0 * B))


def _reference(out_1, out_2):
    # Pure-JAX reference mirroring the PyTorch forward, for a correctness check.
    def l2norm(x):
        nrm = jnp.sqrt(jnp.sum(x * x, axis=-1, keepdims=True))
        return x / jnp.maximum(nrm, 1e-12)

    x1 = l2norm(out_1.astype(jnp.float32))
    x2 = l2norm(out_2.astype(jnp.float32))
    B = x1.shape[0]
    out = jnp.concatenate([x1, x2], axis=0)
    cov = out @ out.T
    neg = jnp.exp(cov / TEMPERATURE)
    rows = jnp.arange(2 * B)[:, None]
    cols = jnp.arange(2 * B)[None, :]
    keep = (cols % B) != (rows % B)
    neg_sum = jnp.sum(jnp.where(keep, neg, 0.0), axis=-1)
    pos = jnp.exp(jnp.sum(x1 * x2, axis=-1) / TEMPERATURE)
    pos = jnp.concatenate([pos, pos], axis=0)
    N = 2 * B - 2
    if DEBIASED:
        ng = (-TAU_PLUS * N * pos + neg_sum) / (1 - TAU_PLUS)
        ng = jnp.maximum(ng, N * math.exp(-1.0 / TEMPERATURE))
        denom = ng + pos
    elif POS_IN_DENOMINATOR:
        denom = neg_sum + pos
    else:
        denom = neg_sum
    return -jnp.mean(jnp.log(pos / (denom + EPS)))


if __name__ == "__main__":
    key = jax.random.PRNGKey(0)
    k1, k2, k3, k4 = jax.random.split(key, 4)

    batch_size, dim = 16, 32
    out_1 = jax.random.normal(k1, (batch_size, dim), dtype=jnp.float32)
    out_2 = jax.random.normal(k2, (batch_size, dim), dtype=jnp.float32)
    ref = _reference(out_1, out_2)

    # 1) Default path (bf16 MXU feed) — tolerance loosened for bf16 similarities.
    loss_bf16 = ntxent_loss(out_1, out_2)
    jax.block_until_ready(loss_bf16)
    assert jnp.allclose(loss_bf16, ref, rtol=3e-2, atol=3e-2), (loss_bf16, ref)

    # 2) f32 matmul path with a small tile -> multi-tile "parallel" partial sums.
    loss_f32 = ntxent_loss(out_1, out_2, row_tile=8, matmul_dtype=jnp.float32)
    jax.block_until_ready(loss_f32)
    assert jnp.allclose(loss_f32, ref, rtol=1e-4, atol=1e-4), (loss_f32, ref)

    # 3) Batch not a multiple of the tile -> zero-padding + row-masking path.
    b_odd = 12
    o1 = jax.random.normal(k3, (b_odd, dim), dtype=jnp.float32)
    o2 = jax.random.normal(k4, (b_odd, dim), dtype=jnp.float32)
    loss_pad = ntxent_loss(o1, o2, matmul_dtype=jnp.float32)
    jax.block_until_ready(loss_pad)
    ref_pad = _reference(o1, o2)
    assert jnp.allclose(loss_pad, ref_pad, rtol=1e-4, atol=1e-4), (loss_pad, ref_pad)

    print("KERNEL_OK")
</pallas_src>

<mosaic_0001>
module attributes {stable_mosaic.version = 11 : i64} {
  func.func @_normalize_kernel(%arg0: i32, %arg1: memref<16x32xf32, #tpu.memory_space<vmem>>, %arg2: memref<16x32xbf16, #tpu.memory_space<vmem>>) attributes {dimension_semantics = [#tpu.dimension_semantics<parallel>], iteration_bounds = array<i64: 2>, scalar_prefetch = 0 : i64, scratch_operands = 0 : i64, tpu.core_type = #tpu.core_type<tc>, window_params = [{transform_indices = @transform_0, window_bounds = array<i64: 16, 32>}, {transform_indices = @transform_1, window_bounds = array<i64: 16, 32>}]} {
    %c0 = arith.constant 0 : index
    %c0_0 = arith.constant 0 : index
    %0 = vector.load %arg1[%c0, %c0_0] : memref<16x32xf32, #tpu.memory_space<vmem>>, vector<16x32xf32>
    %1 = arith.mulf %0, %0 : vector<16x32xf32>
    %cst = arith.constant dense<0.000000e+00> : vector<16xf32>
    %2 = vector.multi_reduction <add>, %1, %cst [1] : vector<16x32xf32> to vector<16xf32>
    %3 = vector.shape_cast %2 : vector<16xf32> to vector<16x1xf32>
    %cst_1 = arith.constant 1.000000e-24 : f32
    %4 = vector.broadcast %cst_1 : f32 to vector<16x1xf32>
    %5 = arith.maximumf %3, %4 : vector<16x1xf32>
    %6 = math.rsqrt %5 : vector<16x1xf32>
    %cst_2 = arith.constant 3.1622777 : f32
    %7 = vector.broadcast %cst_2 : f32 to vector<16x1xf32>
    %8 = arith.mulf %6, %7 : vector<16x1xf32>
    %9 = vector.broadcast %8 : vector<16x1xf32> to vector<16x32xf32>
    %10 = arith.mulf %0, %9 : vector<16x32xf32>
    %11 = arith.truncf %10 : vector<16x32xf32> to vector<16x32xbf16>
    %c0_3 = arith.constant 0 : index
    %c0_4 = arith.constant 0 : index
    %12 = vector.load %arg2[%c0_3, %c0_4] : memref<16x32xbf16, #tpu.memory_space<vmem>>, vector<16x32xbf16>
    tpu.vector_store %arg2[%c0_3, %c0_4], %11 {strides = array<i32>} : memref<16x32xbf16, #tpu.memory_space<vmem>>, vector<16x32xbf16>,
    return
  }
  func.func @transform_0(%arg0: i32) -> (i32, i32) {
    %c0_i32 = arith.constant 0 : i32
    %c0_i32_0 = arith.constant 0 : i32
    return %arg0, %c0_i32 : i32, i32
  }
  func.func @transform_1(%arg0: i32) -> (i32, i32) {
    %c0_i32 = arith.constant 0 : i32
    %c0_i32_0 = arith.constant 0 : i32
    return %arg0, %c0_i32 : i32, i32
  }
}

module attributes {stable_mosaic.version = 11 : i64} {
  func.func @_ntxent_kernel(%arg0: i32, %arg1: memref<32x32xbf16, #tpu.memory_space<vmem>>, %arg2: memref<1x8x128xf32, #tpu.memory_space<vmem>>) attributes {dimension_semantics = [#tpu.dimension_semantics<parallel>], iteration_bounds = array<i64: 1>, scalar_prefetch = 0 : i64, scratch_operands = 0 : i64, tpu.core_type = #tpu.core_type<tc>, window_params = [{pipeline_mode = #tpu.pipeline_mode<synchronous>, transform_indices = @transform_0, window_bounds = array<i64: 32, 32>}, {transform_indices = @transform_1, window_bounds = array<i64: 1, 8, 128>}]} {
    %c16_i32 = arith.constant 16 : i32
    %0 = arith.muli %arg0, %c16_i32 : i32
    %1 = tpu.assume_multiple %0, 16 : i32
    %c16_i32_0 = arith.constant 16 : i32
    %2 = arith.muli %arg0, %c16_i32_0 : i32
    %c16_i32_1 = arith.constant 16 : i32
    %3 = arith.addi %c16_i32_1, %2 : i32
    %4 = tpu.assume_multiple %3, 16 : i32
    %c0 = arith.constant 0 : index
    %c0_2 = arith.constant 0 : index
    %5 = vector.load %arg1[%c0, %c0_2] : memref<32x32xbf16, #tpu.memory_space<vmem>>, vector<32x32xbf16>
    %6 = arith.index_cast %1 : i32 to index
    %c0_3 = arith.constant 0 : index
    %7 = vector.load %arg1[%6, %c0_3] : memref<32x32xbf16, #tpu.memory_space<vmem>>, vector<16x32xbf16>
    %8 = arith.index_cast %4 : i32 to index
    %c0_4 = arith.constant 0 : index
    %9 = vector.load %arg1[%8, %c0_4] : memref<32x32xbf16, #tpu.memory_space<vmem>>, vector<16x32xbf16>
    %cst = arith.constant dense<0.000000e+00> : vector<16x32xf32>
    %10 = tpu.matmul %7, %5, %cst {dimension_numbers = #tpu.dot_dimension_numbers<[1], [1], [0], [0], [0, 0, 1, 0], [], []>} : vector<16x32xbf16>, vector<32x32xbf16>, vector<16x32xf32> -> vector<16x32xf32>
    %cst_5 = arith.constant dense<0.000000e+00> : vector<16x32xf32>
    %11 = tpu.matmul %9, %5, %cst_5 {dimension_numbers = #tpu.dot_dimension_numbers<[1], [1], [0], [0], [0, 0, 1, 0], [], []>} : vector<16x32xbf16>, vector<32x32xbf16>, vector<16x32xf32> -> vector<16x32xf32>
    %12 = tpu.iota {dimensions = array<i32: 0>} : vector<16x32xi32>
    %13 = vector.broadcast %1 : i32 to vector<16x32xi32>
    %14 = arith.addi %12, %13 : vector<16x32xi32>
    %15 = tpu.iota {dimensions = array<i32: 1>} : vector<16x32xi32>
    %16 = arith.cmpi ne, %15, %14 : vector<16x32xi32>
    %c16_i32_6 = arith.constant 16 : i32
    %17 = vector.broadcast %c16_i32_6 : i32 to vector<16x32xi32>
    %18 = arith.addi %14, %17 : vector<16x32xi32>
    %19 = arith.cmpi ne, %15, %18 : vector<16x32xi32>
    %20 = arith.andi %16, %19 : vector<16x32xi1>
    %cst_7 = arith.constant 0xFF800000 : f32
    %21 = vector.broadcast %cst_7 : f32 to vector<16x32xf32>
    %22 = arith.select %20, %10, %21 : vector<16x32xi1>, vector<16x32xf32>
    %23 = math.exp %22 : vector<16x32xf32>
    %cst_8 = arith.constant dense<0.000000e+00> : vector<16xf32>
    %24 = vector.multi_reduction <add>, %23, %cst_8 [1] : vector<16x32xf32> to vector<16xf32>
    %25 = vector.shape_cast %24 : vector<16xf32> to vector<16x1xf32>
    %cst_9 = arith.constant 0xFF800000 : f32
    %26 = vector.broadcast %cst_9 : f32 to vector<16x32xf32>
    %27 = arith.select %20, %11, %26 : vector<16x32xi1>, vector<16x32xf32>
    %28 = math.exp %27 : vector<16x32xf32>
    %cst_10 = arith.constant dense<0.000000e+00> : vector<16xf32>
    %29 = vector.multi_reduction <add>, %28, %cst_10 [1] : vector<16x32xf32> to vector<16xf32>
    %30 = vector.shape_cast %29 : vector<16xf32> to vector<16x1xf32>
    %31 = arith.extf %7 : vector<16x32xbf16> to vector<16x32xf32>
    %32 = arith.extf %9 : vector<16x32xbf16> to vector<16x32xf32>
    %33 = arith.mulf %31, %32 : vector<16x32xf32>
    %cst_11 = arith.constant dense<0.000000e+00> : vector<16xf32>
    %34 = vector.multi_reduction <add>, %33, %cst_11 [1] : vector<16x32xf32> to vector<16xf32>
    %35 = vector.shape_cast %34 : vector<16xf32> to vector<16x1xf32>
    %36 = math.exp %35 : vector<16x1xf32>
    %cst_12 = arith.constant -3.000000e+00 : f32
    %37 = vector.broadcast %cst_12 : f32 to vector<16x1xf32>
    %38 = arith.mulf %36, %37 : vector<16x1xf32>
    %39 = arith.addf %38, %25 : vector<16x1xf32>
    %cst_13 = arith.constant 1.11111116 : f32
    %40 = vector.broadcast %cst_13 : f32 to vector<16x1xf32>
    %41 = arith.mulf %39, %40 : vector<16x1xf32>
    %cst_14 = arith.constant 0.00136199791 : f32
    %42 = vector.broadcast %cst_14 : f32 to vector<16x1xf32>
    %43 = arith.maximumf %41, %42 : vector<16x1xf32>
    %44 = arith.addf %43, %36 : vector<16x1xf32>
    %cst_15 = arith.constant 9.99999997E-7 : f32
    %45 = vector.broadcast %cst_15 : f32 to vector<16x1xf32>
    %46 = arith.addf %44, %45 : vector<16x1xf32>
    %47 = math.log %46 : vector<16x1xf32>
    %48 = arith.subf %47, %35 : vector<16x1xf32>
    %cst_16 = arith.constant -3.000000e+00 : f32
    %49 = vector.broadcast %cst_16 : f32 to vector<16x1xf32>
    %50 = arith.mulf %36, %49 : vector<16x1xf32>
    %51 = arith.addf %50, %30 : vector<16x1xf32>
    %cst_17 = arith.constant 1.11111116 : f32
    %52 = vector.broadcast %cst_17 : f32 to vector<16x1xf32>
    %53 = arith.mulf %51, %52 : vector<16x1xf32>
    %cst_18 = arith.constant 0.00136199791 : f32
    %54 = vector.broadcast %cst_18 : f32 to vector<16x1xf32>
    %55 = arith.maximumf %53, %54 : vector<16x1xf32>
    %56 = arith.addf %55, %36 : vector<16x1xf32>
    %cst_19 = arith.constant 9.99999997E-7 : f32
    %57 = vector.broadcast %cst_19 : f32 to vector<16x1xf32>
    %58 = arith.addf %56, %57 : vector<16x1xf32>
    %59 = math.log %58 : vector<16x1xf32>
    %60 = arith.subf %59, %35 : vector<16x1xf32>
    %61 = arith.addf %48, %60 : vector<16x1xf32>
    %cst_20 = arith.constant dense<0.000000e+00> : vector<1xf32>
    %62 = vector.multi_reduction <add>, %61, %cst_20 [0] : vector<16x1xf32> to vector<1xf32>
    %63 = vector.shape_cast %62 : vector<1xf32> to vector<1x1xf32>
    %64 = vector.shape_cast %63 : vector<1x1xf32> to vector<1x1x1xf32>
    %65 = vector.shape_cast %64 : vector<1x1x1xf32> to vector<1x1x1xf32>
    %66 = vector.broadcast %65 : vector<1x1x1xf32> to vector<1x8x128xf32>
    %c0_21 = arith.constant 0 : index
    %c0_22 = arith.constant 0 : index
    %c0_23 = arith.constant 0 : index
    %67 = vector.load %arg2[%c0_21, %c0_22, %c0_23] : memref<1x8x128xf32, #tpu.memory_space<vmem>>, vector<1x8x128xf32>
    tpu.vector_store %arg2[%c0_21, %c0_22, %c0_23], %66 {strides = array<i32>} : memref<1x8x128xf32, #tpu.memory_space<vmem>>, vector<1x8x128xf32>,
    return
  }
  func.func @transform_0(%arg0: i32) -> (i32, i32) {
    %c0_i32 = arith.constant 0 : i32
    %c0_i32_0 = arith.constant 0 : i32
    %c0_i32_1 = arith.constant 0 : i32
    return %c0_i32, %c0_i32_0 : i32, i32
  }
  func.func @transform_1(%arg0: i32) -> (i32, i32, i32) {
    %c0_i32 = arith.constant 0 : i32
    %c0_i32_0 = arith.constant 0 : i32
    %c0_i32_1 = arith.constant 0 : i32
    return %arg0, %c0_i32, %c0_i32_0 : i32, i32, i32
  }
}

</mosaic_0001>

<bundles_post_ra>
// kernel: ntxent_loss.2
= control target key start
LH: loop header
LB: loop body
LE: loop exit
PB: predicated region body
PF: predicated region fallthrough
CT: control target
= control target key end

     0   :  { %s259_s6 = smov 0   ;;  %s280_s0 = inlined_call_operand.vmem [shape: f32[32,32], index: 0, kind: input, shape index: {}]   ;;  %s281_s1 = inlined_call_operand.vmem [shape: bf16[32,32], index: 1, kind: output, shape index: {}]  }
   0x1 LB: > { %s218_s7 = sadd.s32 4294967295, %s247_s6   ;;  %p222_p0 = scmp.ge.s32.totalorder %s247_s6, 1  ;;  %s247_s6 = sphi %s259_s6, %s11_s6  }
   0x2   : > { %p88_p1 = scmp.lt.s32.totalorder %s247_s6, 3 }
   0x4   : > { %p89_p2 = pnand %p222_p0, %p88_p1 }
   0x5   : > { %s223_s8 = sshll.u32 (!%p89_p2), %s218_s7, 1 }
   0x6   : > { %92 = sbr.rel (%p89_p2) target bundleno = 169 (0xa9), region = 24  ;;  %p109_p3 = scmp.lt.s32.totalorder (!%p89_p2), %s223_s8, 3 }
   0xb   : > { %s283_s8 = smov (!%p109_p3, %s223_s8), 3  ;;  %vm124_vm0 = vcmask 261120   ;;  %vm159_vm4 = vcmask 257024  }
   0xc   : > { %s224_s9 = sshll.u32 %s283_s8, 3  ;;  %s226_s13 = sshll.u32 %s283_s8, 2 }
   0xd   : > { %s112_s12 = scalar_lea.vmem %s280_s0, %s224_s9  ;;  %s118_s16 = scalar_lea.vmem %s281_s1, %s226_s13 }
   0xe   : > { %v120_v0 = vld [vmem:[%s112_s12] sm:$0xff]  ;;  %v121_v2 = vld [vmem:[%s112_s12 + $0x8] sm:$0xff] }
   0xf   : > { %v122_v1 = vmul.f32 %v120_v0, %v120_v0  ;;  %v123_v4 = vmul.f32 %v121_v2, %v121_v2 }
  0x11   : > { %v125_v3 = vsel %vm124_vm0, %v122_v1, 0.0  ;;  %v128_v5 = vsel %vm124_vm0, %v123_v4, 0.0 }
  0x12   : > { %126 = vadd.xlane.f32.xlu0 %v125_v3 }
  0x1a   : > { %129 = vadd.xlane.f32.xlu0 %v128_v5 }
  0x85   : > { %v127_v6 = vpop.xlane.xlu0 %126 }
  0x86   : > { %v131_v7 = vmax.f32 %v127_v6, 1e-24 }
  0x88   : > { %237 = vrsqrt.f32 %v131_v7  ;;  %vm139_vm2 = vweird.f32 %v131_v7 }
  0x8d   : > { %v130_v8 = vpop.xlane.xlu0 %129 }
  0x8e   : > { %v238_v9 = vpop.eup %237  ;;  %v132_v10 = vmax.f32 %v130_v8, 1e-24 }
  0x8f   : > { %v134_v11 = vmul.f32 %v238_v9, %v131_v7  ;;  %vm140_vm1 = vweird.f32 %v238_v9 }
  0x90   : > { %239 = vrsqrt.f32 %v132_v10  ;;  %vm141_vm3 = vmor %vm139_vm2, %vm140_vm1  ;;  %vm149_vm6 = vweird.f32 %v132_v10 }
  0x91   : > { %v135_v12 = vmul.f32 %v238_v9, %v134_v11 }
  0x93   : > { %v136_v13 = vmul.f32 0.5, %v135_v12 }
  0x95   : > { %v137_v14 = vsub.f32 1.5, %v136_v13 }
  0x96   : > { %v240_v15 = vpop.eup %239 }
  0x97   : > { %v138_v16 = vmul.f32 %v238_v9, %v137_v14  ;;  %v144_v17 = vmul.f32 %v240_v15, %v132_v10  ;;  %vm150_vm5 = vweird.f32 %v240_v15 }
  0x98   : > { %vm151_vm7 = vmor %vm149_vm6, %vm150_vm5 }
  0x99   : > { %v142_v18 = vsel %vm141_vm3, %v238_v9, %v138_v16  ;;  %v145_v19 = vmul.f32 %v240_v15, %v144_v17 }
  0x9a   : > { %v153_v20 = vmul.f32 3.1622777, %v142_v18 }
  0x9b   : > { %v146_v21 = vmul.f32 0.5, %v145_v19 }
  0x9c   : > { %v155_v22 = vmul.f32 %v153_v20, %v120_v0 }
  0x9d   : > { %v147_v23 = vsub.f32 1.5, %v146_v21 }
  0x9e   : > { %v157_v24 = vpack.c.bf16 %v155_v22, %v155_v22 }
  0x9f   : > { %v148_v25 = vmul.f32 %v240_v15, %v147_v23 }
  0xa0   : > { %160 = vst.msk [vmem:[%s118_s16] sm:$0xf] %vm159_vm4, %v157_v24 }
  0xa1   : > { %v152_v26 = vsel %vm151_vm7, %v240_v15, %v148_v25 }
  0xa2   : > { %v154_v27 = vmul.f32 3.1622777, %v152_v26 }
  0xa4   : > { %v156_v28 = vmul.f32 %v154_v27, %v121_v2 }
  0xa6   : > { %v158_v29 = vpack.c.bf16 %v156_v28, %v156_v28 }
  0xa8   : > { %161 = vst.msk [vmem:[%s118_s16 + $0x4] sm:$0xf] %vm159_vm4, %v158_v29 }
  0xa9 PF: > { %s11_s6 = sadd.s32 1, %s247_s6  }
  0xaa   : > { %p8_p4 = scmp.ge.s32.totalorder %s11_s6, 4  }
  0xac   :  { %10 = sbr.rel (!%p8_p4) target bundleno = 1 (0x1), region = 54 }

// kernel: ntxent_loss.3
= control target key start
LH: loop header
LB: loop body
LE: loop exit
PB: predicated region body
PF: predicated region fallthrough
CT: control target
= control target key end

     0   :  { %vm42_vm0 = vcmask 261120   ;;  %v88_v16 = vlaneseq  ;;  %s281_s0 = inlined_call_operand.vmem [shape: bf16[32,32], index: 0, kind: input, shape index: {}]   ;;  %s282_s1 = inlined_call_operand.vmem [shape: f32[1,8,128], index: 1, kind: output, shape index: {}]  }
   0x1   :  { %v217_v0 = vld [vmem:[%s281_s0 + $0x8] sm:$0xff]  ;;  %v216_v2 = vld [vmem:[%s281_s0] sm:$0xff] }
   0x2   :  { %v50_v1 = vsel %vm42_vm0, %v217_v0, 0  ;;  %v47_v3 = vsel %vm42_vm0, %v216_v2, 0  ;;  %v218_v4 = vld [vmem:[%s281_s0] sm:$0xff]  ;;  %v219_v5 = vld [vmem:[%s281_s0 + $0x8] sm:$0xff]  ;;  %v89_v17 = vshrl.u32 %v88_v16, 7  ;;  %v95_v18 = vand.u32 127, %v88_v16 }
   0x3   :  { %58 = vmatpush.bf16.xpose.msra.mxu0 %v50_v1  ;;  %80 = vmatpush.bf16.xpose.msra.mxu1 %v50_v1  ;;  %v19_v6 = vld [vmem:[%s281_s0] sm:$0xff]   ;;  %v196_v7 = vld [vmem:[%s281_s0 + $0x8] sm:$0xff]  }
   0x4   :  { %v128_v8 = vunpack.c.l.bf16 %v19_v6  ;;  %v130_v9 = vunpack.c.l.bf16 %v196_v7  ;;  %v129_v12 = vunpack.c.h.bf16 %v19_v6  ;;  %v131_v13 = vunpack.c.h.bf16 %v196_v7 }
   0x5   :  { %v98_v19 = vadd.s32 16, %v89_v17  ;;  %vm96_vm1 = vcmp.ne.s32.totalorder %v95_v18, %v89_v17  ;;  %v90_v20 = vadd.s32 8, %v89_v17 }
   0x6   :  { %v132_v10 = vmul.f32 %v130_v9, %v128_v8  ;;  %v133_v14 = vmul.f32 %v131_v13, %v129_v12 }
   0x7   :  { %vm100_vm2 = vcmp.ne.s32.totalorder %v95_v18, %v98_v19  ;;  %v99_v21 = vadd.s32 16, %v90_v20  ;;  %vm97_vm4 = vcmp.ne.s32.totalorder %v95_v18, %v90_v20 }
   0x8   :  { %v134_v11 = vsel %vm42_vm0, %v132_v10, 0.0  ;;  %v137_v15 = vsel %vm42_vm0, %v133_v14, 0.0  ;;  %vm102_vm3 = vmand %vm96_vm1, %vm100_vm2 }
   0x9   :  { %135 = vadd.xlane.f32.xlu0 %v134_v11  ;;  %vm101_vm5 = vcmp.ne.s32.totalorder %v95_v18, %v99_v21 }
   0xa   :  { %vm103_vm6 = vmand %vm97_vm4, %vm101_vm5 }
   0xb   :  { %59 = vmatpush.bf16.xpose.msra.mxu0 %v47_v3  ;;  %81 = vmatpush.bf16.xpose.msra.mxu1 %v47_v3 }
  0x11   :  { %138 = vadd.xlane.f32.xlu0 %v137_v15 }
  0x12   :  { %210 = vmatmul.msk.bf16.vlgmr.msra.gmra.mxu0 %vm42_vm0, %v218_v4  ;;  %215 = vmatmul.msk.bf16.vlgmr.msra.gmra.mxu1 %vm42_vm0, %v219_v5 }
  0x7c   :  { %v136_v42 = vpop.xlane.xlu0 %135 }
  0x7d   :  { %v140_v43 = vmul.f32 1.442695, %v136_v42 }
  0x84   :  { %v139_v44 = vpop.xlane.xlu0 %138 }
  0x85   :  { %v142_v45 = vmul.f32 1.442695, %v139_v44 }
  0x8f   :  { %v61_v22 = vpop.f32.mrf.mxu0  ;;  %v83_v23 = vpop.f32.mrf.mxu1 }
  0x90   :  { %v104_v24 = vsel %vm102_vm3, %v61_v22, -inf  ;;  %v116_v25 = vsel %vm102_vm3, %v83_v23, -inf }
  0x91   :  { %v106_v26 = vmul.f32 1.442695, %v104_v24  ;;  %v118_v27 = vmul.f32 1.442695, %v116_v25 }
  0x93   :  { %220 = vpow2.f32 %v106_v26 }
  0x94   :  { %222 = vpow2.f32 %v118_v27 }
  0x97   :  { %v63_v28 = vpop.f32.mrf.mxu0  ;;  %v85_v29 = vpop.f32.mrf.mxu1 }
  0x98   :  { %v105_v30 = vsel %vm103_vm6, %v63_v28, -inf  ;;  %v117_v31 = vsel %vm103_vm6, %v85_v29, -inf }
  0x99   :  { %v221_v32 = vpop.eup %220  ;;  %v108_v33 = vmul.f32 1.442695, %v105_v30  ;;  %v120_v34 = vmul.f32 1.442695, %v117_v31 }
  0x9a   :  { %v223_v35 = vpop.eup %222  ;;  %v110_v36 = vsel %vm42_vm0, %v221_v32, 0.0 }
  0x9b   :  { %224 = vpow2.f32 %v108_v33  ;;  %v122_v37 = vsel %vm42_vm0, %v223_v35, 0.0  ;;  %111 = vadd.xlane.f32.xlu1 %v110_v36 }
  0x9c   :  { %226 = vpow2.f32 %v120_v34  ;;  %123 = vadd.xlane.f32.xlu2 %v122_v37 }
  0x9d   :  { %228 = vpow2.f32 %v140_v43 }
  0x9e   :  { %230 = vpow2.f32 %v142_v45 }
  0xa1   :  { %v225_v38 = vpop.eup %224 }
  0xa2   :  { %v227_v39 = vpop.eup %226  ;;  %v113_v40 = vsel %vm42_vm0, %v225_v38, 0.0 }
  0xa3   :  { %v125_v41 = vsel %vm42_vm0, %v227_v39, 0.0  ;;  %114 = vadd.xlane.f32.xlu1 %v113_v40  ;;  %v229_v46 = vpop.eup %228 }
  0xa4   :  { %126 = vadd.xlane.f32.xlu2 %v125_v41  ;;  %v144_v47 = vmul.f32 -3.0, %v229_v46  ;;  %v231_v51 = vpop.eup %230 }
  0xa5   :  { %v145_v56 = vmul.f32 -3.0, %v231_v51 }
 0x10e   :  { %v112_v48 = vpop.xlane.xlu1 %111 }
 0x10f   :  { %v124_v49 = vpop.xlane.xlu2 %123  ;;  %v146_v50 = vadd.f32 %v144_v47, %v112_v48 }
 0x110   :  { %v162_v52 = vadd.f32 %v144_v47, %v124_v49 }
 0x111   :  { %v148_v53 = vmul.f32 1.1111112, %v146_v50 }
 0x112   :  { %v164_v54 = vmul.f32 1.1111112, %v162_v52 }
 0x113   :  { %v150_v55 = vmax.f32 %v148_v53, 0.0013619979 }
 0x114   :  { %v166_v57 = vmax.f32 %v164_v54, 0.0013619979 }
 0x115   :  { %v152_v58 = vadd.f32 %v229_v46, %v150_v55 }
 0x116   :  { %v168_v59 = vadd.f32 %v229_v46, %v166_v57  ;;  %v115_v60 = vpop.xlane.xlu1 %114 }
 0x117   :  { %v154_v61 = vadd.f32 1e-06, %v152_v58  ;;  %v127_v62 = vpop.xlane.xlu2 %126  ;;  %v147_v63 = vadd.f32 %v145_v56, %v115_v60 }
 0x118   :  { %v170_v0 = vadd.f32 1e-06, %v168_v59  ;;  %v163_v1 = vadd.f32 %v145_v56, %v127_v62 }
 0x119   :  { %v149_v2 = vmul.f32 1.1111112, %v147_v63  ;;  %232 = vlog2.f32 %v154_v61 }
 0x11a   :  { %v165_v3 = vmul.f32 1.1111112, %v163_v1  ;;  %234 = vlog2.f32 %v170_v0 }
 0x11b   :  { %v151_v4 = vmax.f32 %v149_v2, 0.0013619979 }
 0x11c   :  { %v167_v5 = vmax.f32 %v165_v3, 0.0013619979 }
 0x11d   :  { %v153_v6 = vadd.f32 %v231_v51, %v151_v4 }
 0x11e   :  { %v169_v7 = vadd.f32 %v231_v51, %v167_v5 }
 0x11f   :  { %v155_v8 = vadd.f32 1e-06, %v153_v6  ;;  %v233_v10 = vpop.eup %232 }
 0x120   :  { %v171_v9 = vadd.f32 1e-06, %v169_v7  ;;  %v235_v11 = vpop.eup %234  ;;  %v157_v13 = vmul.f32 0.6931472, %v233_v10 }
 0x121   :  { %236 = vlog2.f32 %v155_v8  ;;  %v173_v12 = vmul.f32 0.6931472, %v235_v11 }
 0x122   :  { %238 = vlog2.f32 %v171_v9  ;;  %v160_v18 = vsub.f32 %v157_v13, %v136_v42 }
 0x123   :  { %v176_v17 = vsub.f32 %v173_v12, %v136_v42 }
 0x125   :  { %v178_v22 = vadd.f32 %v176_v17, %v160_v18 }
 0x127   :  { %v237_v14 = vpop.eup %236 }
 0x128   :  { %v239_v15 = vpop.eup %238  ;;  %v159_v16 = vmul.f32 0.6931472, %v237_v14 }
 0x129   :  { %v175_v19 = vmul.f32 0.6931472, %v239_v15 }
 0x12a   :  { %v161_v20 = vsub.f32 %v159_v16, %v139_v44 }
 0x12b   :  { %v177_v21 = vsub.f32 %v175_v19, %v139_v44 }
 0x12d   :  { %v179_v23 = vadd.f32 %v177_v21, %v161_v20 }
 0x12f   :  { %v180_v24 = vadd.f32 %v179_v23, %v178_v22 }
 0x131   :  { %v181_v25 = vrot.slane %v180_v24, 4 }
 0x133   :  { %v182_v26 = vadd.f32 %v181_v25, %v180_v24 }
 0x135   :  { %v183_v27 = vrot.slane %v182_v26, 2 }
 0x137   :  { %v184_v28 = vadd.f32 %v183_v27, %v182_v26 }
 0x139   :  { %v185_v29 = vrot.slane %v184_v28, 1 }
 0x13b   :  { %v186_v30 = vadd.f32 %v185_v29, %v184_v28 }
 0x13d   :  { %187 = vst [vmem:[%s282_s1] sm:$0xff] %v186_v30 }

</bundles_post_ra>
